<compile_context>
chip_gen: v6e
topology: v6e:2x2x1
jax: 0.10.0
libtpu: 0.0.40
codegen_flags: <defaults>
</compile_context>

<pallas_src>
import jax
import jax.numpy as jnp
from jax.experimental import pallas as pl
from jax.experimental.pallas import tpu as pltpu

KERNEL_SIZE = 9
LANE = 128


def _round_up(x, m):
    return (x + m - 1) // m * m


def _pick_tile_m(m, requested):
    """Lane-aligned M tile: as large as useful, >=2 grid steps when M allows."""
    m128 = _round_up(m, LANE)
    t = min(_round_up(max(requested, LANE), LANE), m128)
    if m128 // t < 2 and m128 >= 2 * LANE:
        # Split into (at least) two tiles so v7x's two TensorCores both run.
        t = (m128 // LANE + 1) // 2 * LANE
    return t


def _conv_matmul_kernel(w_ref, p_ref, o_ref):
    # w_ref: (Cout_pad, K_pad)   bf16 weights (+ bias column); grid-invariant
    # p_ref: (K_pad,    tile_m)  bf16 im2col patches^T (+ ones row); streamed
    # o_ref: (Cout_pad, tile_m)  lane-dense output tile (unmasked stores)
    acc = jnp.dot(w_ref[...], p_ref[...], preferred_element_type=jnp.float32)
    o_ref[...] = jnp.maximum(acc, 0.0).astype(o_ref.dtype)  # fused ReLU


def capsule_conv_layer(x_nchw, w_oihw, bias, *, tile_m=512,
                       out_dtype=jnp.bfloat16):
    """Forward pass of CapsuleConvLayer: relu(conv2d(x, w, b, k=9, s=1))."""
    N, C_in, H, W = x_nchw.shape
    C_out, _, KH, KW = w_oihw.shape
    H_out = H - KH + 1
    W_out = W - KW + 1
    M = N * H_out * W_out
    K = KH * KW * C_in

    # -------------- wrapper-side layout plumbing (no FLOPs) --------------
    x_nhwc = jnp.transpose(x_nchw, (0, 2, 3, 1))                  # (N,H,W,Cin)

    # im2col, built directly in the TRANSPOSED orientation (K rows, M lanes):
    # p[(kh,kw,cin), (n,ho,wo)] = x[n, ho+kh, wo+kw, cin]
    taps = [
        x_nhwc[:, kh:kh + H_out, kw:kw + W_out, :]
        for kh in range(KH)
        for kw in range(KW)
    ]
    p = jnp.stack(taps, axis=0)                                   # (KH*KW,N,Ho,Wo,Cin)
    p = jnp.transpose(p, (0, 4, 1, 2, 3)).reshape(K, M)           # (K, M)
    # Fold bias into the matmul: ones row on patches, bias column on weights.
    p = jnp.concatenate([p, jnp.ones((1, M), p.dtype)], axis=0)   # (K+1, M)

    # Weights: OIHW -> (C_out, KH, KW, C_in) -> (C_out, K); same (kh,kw,cin) order.
    w_mat = jnp.transpose(w_oihw, (0, 2, 3, 1)).reshape(C_out, K)
    w_mat = jnp.concatenate(
        [w_mat, bias.reshape(C_out, 1).astype(w_mat.dtype)], axis=1)
    K1 = K + 1

    # -------------- padding / tiling --------------
    tile = _pick_tile_m(M, tile_m)
    M_pad = _round_up(M, tile)
    K_pad = _round_up(K1, 16)                       # sublane granule (bf16)
    out_itemsize = jnp.dtype(out_dtype).itemsize
    sub = 8 * (4 // out_itemsize)                   # f32 -> 8, bf16 -> 16
    Cout_pad = _round_up(C_out, sub)                # 8 -> 16 (not 128!)

    p = jnp.pad(p, ((0, K_pad - K1), (0, M_pad - M))).astype(jnp.bfloat16)
    w_mat = jnp.pad(
        w_mat, ((0, Cout_pad - C_out), (0, K_pad - K1))).astype(jnp.bfloat16)

    grid = (M_pad // tile,)
    cost = pl.CostEstimate(
        flops=2 * M_pad * K_pad * Cout_pad,
        transcendentals=0,
        bytes_accessed=(Cout_pad * K_pad * 2 + K_pad * M_pad * 2
                        + Cout_pad * M_pad * out_itemsize),
    )

    out = pl.pallas_call(
        _conv_matmul_kernel,
        out_shape=jax.ShapeDtypeStruct((Cout_pad, M_pad), out_dtype),
        grid_spec=pltpu.PrefetchScalarGridSpec(
            num_scalar_prefetch=0,
            grid=grid,
            in_specs=[
                # weights: grid-invariant block -> stays resident in VMEM
                pl.BlockSpec((Cout_pad, K_pad), lambda i: (0, 0)),
                # patches: streamed along the lane-major M axis
                pl.BlockSpec((K_pad, tile), lambda i: (0, i)),
            ],
            out_specs=pl.BlockSpec((Cout_pad, tile), lambda i: (0, i)),
        ),
        compiler_params=pltpu.CompilerParams(
            dimension_semantics=("parallel",),
            allow_input_fusion=[True, True],
        ),
        cost_estimate=cost,
    )(w_mat, p)

    # Strip padding, back to PyTorch NCHW output layout.
    out = out[:C_out, :M].reshape(C_out, N, H_out, W_out)
    return jnp.transpose(out, (1, 0, 2, 3))


if __name__ == "__main__":
    # batch=2, in_channels=4, spatial=16x16 -> out spatial 8x8, out_channels=8.
    N, C_in, H, W = 2, 4, 16, 16
    C_out = 8

    key = jax.random.PRNGKey(0)
    kx, kw, kb = jax.random.split(key, 3)

    x = jax.random.normal(kx, (N, C_in, H, W), dtype=jnp.float32)
    fan_in = C_in * KERNEL_SIZE * KERNEL_SIZE
    bound = 1.0 / (fan_in ** 0.5)
    w = jax.random.uniform(kw, (C_out, C_in, KERNEL_SIZE, KERNEL_SIZE),
                           minval=-bound, maxval=bound, dtype=jnp.float32)
    b = jax.random.uniform(kb, (C_out,), minval=-bound, maxval=bound,
                           dtype=jnp.float32)

    out = jax.jit(capsule_conv_layer)(x, w, b)
    out = jax.block_until_ready(out)
    assert out.shape == (N, C_out, H - KERNEL_SIZE + 1, W - KERNEL_SIZE + 1)
    out_f32 = out.astype(jnp.float32)

    # Check 1 (tight): reference conv with the same bf16 operand precision and
    # f32 accumulation -- validates the kernel's math / indexing.  Tolerance
    # also covers the bf16 output store.
    ref_bf16 = jax.lax.conv_general_dilated(
        x.astype(jnp.bfloat16), w.astype(jnp.bfloat16),
        window_strides=(1, 1), padding="VALID",
        dimension_numbers=("NCHW", "OIHW", "NCHW"),
        preferred_element_type=jnp.float32)
    ref_bf16 = jnp.maximum(ref_bf16 + b[None, :, None, None], 0.0)
    assert jnp.allclose(out_f32, ref_bf16, atol=2e-2, rtol=2e-2)

    # Check 2 (loose): full-f32 nn.Conv2d + ReLU semantics; tolerance accounts
    # for the deliberate bf16 operand/output cast (f32 accumulation keeps it
    # close).
    ref_f32 = jax.lax.conv_general_dilated(
        x, w, window_strides=(1, 1), padding="VALID",
        dimension_numbers=("NCHW", "OIHW", "NCHW"))
    ref_f32 = jnp.maximum(ref_f32 + b[None, :, None, None], 0.0)
    assert jnp.allclose(out_f32, ref_f32, atol=6e-2, rtol=6e-2)

    print("KERNEL_OK")
</pallas_src>

<mosaic_0001>
module attributes {stable_mosaic.version = 11 : i64} {
  func.func @_conv_matmul_kernel(%arg0: i32, %arg1: memref<16x336xbf16, #tpu.memory_space<vmem>>, %arg2: memref<336x128xbf16, #tpu.memory_space<vmem>>, %arg3: memref<16x128xbf16, #tpu.memory_space<vmem>>) attributes {dimension_semantics = [#tpu.dimension_semantics<parallel>], iteration_bounds = array<i64: 1>, scalar_prefetch = 0 : i64, scratch_operands = 0 : i64, tpu.core_type = #tpu.core_type<tc>, window_params = [{pipeline_mode = #tpu.pipeline_mode<synchronous>, transform_indices = @transform_0, window_bounds = array<i64: 16, 336>}, {transform_indices = @transform_1, window_bounds = array<i64: 336, 128>}, {transform_indices = @transform_2, window_bounds = array<i64: 16, 128>}]} {
    %c0 = arith.constant 0 : index
    %c0_0 = arith.constant 0 : index
    %0 = vector.load %arg1[%c0, %c0_0] : memref<16x336xbf16, #tpu.memory_space<vmem>>, vector<16x336xbf16>
    %c0_1 = arith.constant 0 : index
    %c0_2 = arith.constant 0 : index
    %1 = vector.load %arg2[%c0_1, %c0_2] : memref<336x128xbf16, #tpu.memory_space<vmem>>, vector<336x128xbf16>
    %cst = arith.constant dense<0.000000e+00> : vector<16x128xf32>
    %2 = tpu.matmul %0, %1, %cst {dimension_numbers = #tpu.dot_dimension_numbers<[1], [0], [0], [1], [0, 0, 1, 1], [], []>} : vector<16x336xbf16>, vector<336x128xbf16>, vector<16x128xf32> -> vector<16x128xf32>
    %cst_3 = arith.constant 0.000000e+00 : f32
    %3 = vector.broadcast %cst_3 : f32 to vector<16x128xf32>
    %4 = arith.maximumf %2, %3 : vector<16x128xf32>
    %5 = arith.truncf %4 : vector<16x128xf32> to vector<16x128xbf16>
    %c0_4 = arith.constant 0 : index
    %c0_5 = arith.constant 0 : index
    %6 = vector.load %arg3[%c0_4, %c0_5] : memref<16x128xbf16, #tpu.memory_space<vmem>>, vector<16x128xbf16>
    tpu.vector_store %arg3[%c0_4, %c0_5], %5 {strides = array<i32>} : memref<16x128xbf16, #tpu.memory_space<vmem>>, vector<16x128xbf16>,
    return
  }
  func.func @transform_0(%arg0: i32) -> (i32, i32) {
    %c0_i32 = arith.constant 0 : i32
    %c0_i32_0 = arith.constant 0 : i32
    %c0_i32_1 = arith.constant 0 : i32
    return %c0_i32, %c0_i32_0 : i32, i32
  }
  func.func @transform_1(%arg0: i32) -> (i32, i32) {
    %c0_i32 = arith.constant 0 : i32
    %c0_i32_0 = arith.constant 0 : i32
    return %c0_i32, %arg0 : i32, i32
  }
  func.func @transform_2(%arg0: i32) -> (i32, i32) {
    %c0_i32 = arith.constant 0 : i32
    %c0_i32_0 = arith.constant 0 : i32
    return %c0_i32, %arg0 : i32, i32
  }
}

</mosaic_0001>

<bundles_post_ra>
// kernel: capsule_conv_layer.2
= control target key start
LH: loop header
LB: loop body
LE: loop exit
PB: predicated region body
PF: predicated region fallthrough
CT: control target
= control target key end

     0   :  { %s2461_s0 = inlined_call_operand.<no memory space> [shape: s32[], index: 0, kind: input, shape index: {}]   ;;  %s2462_s1 = inlined_call_operand.vmem [shape: bf16[324,128], index: 1, kind: input, shape index: {}]   ;;  %s2463_s2 = inlined_call_operand.<no memory space> [shape: bf16[], index: 2, kind: input, shape index: {}]   ;;  %s2464_s3 = inlined_call_operand.<no memory space> [shape: bf16[], index: 3, kind: input, shape index: {}]   ;;  %s2465_s4 = inlined_call_operand.vmem [shape: bf16[8,1], index: 4, kind: input, shape index: {}]   ;;  %s2466_s5 = inlined_call_operand.<no memory space> [shape: bf16[], index: 5, kind: input, shape index: {}]   ;;  %s2467_s6 = inlined_call_operand.<no memory space> [shape: s32[], index: 6, kind: input, shape index: {}]   ;;  %s2468_s7 = inlined_call_operand.vmem [shape: bf16[8,324], index: 7, kind: input, shape index: {}]   ;;  %s2469_s8 = inlined_call_operand.vmem [shape: bf16[16,128], index: 8, kind: output, shape index: {}]  }
   0x1   :  { %v13_v0 = vstv %s2466_s5  ;;  %v2077_v1 = vstv %s2461_s0  ;;  %v19_v2 = vstv %s2467_s6  ;;  %v25_v3 = vstv %s2464_s3 }
   0x2   :  { %v2085_v4 = vunpack.i.l.bf16 %v13_v0  ;;  %v2087_v5 = vunpack.i.l.bf16 %v25_v3  ;;  %v31_v6 = vstv %s2463_s2 }
   0x3   :  { %v2092_v7 = vunpack.i.l.bf16 %v31_v6 }
   0x4   :  { %v86_v8 = vld [vmem:[%s2465_s4] sm:$0xf]  ;;  %v106_v9 = vlaneseq  ;;  %v1908_v10 = vld [vmem:[%s2462_s1 + $0x78] sm:$0xff]   ;;  %v1906_v16 = vld [vmem:[%s2462_s1 + $0x70] sm:$0xff]   ;;  %v2023_v19 = vmov 0.0   ;;  %s2024_s22 = smov 68  }
   0x5   :  { %v1892_v11 = vld [vmem:[%s2462_s1 + $0x38] sm:$0xff]   ;;  %v87_v12 = vunpack.c.l.bf16 %v86_v8  ;;  %v1238_v13 = vunpack.c.l.bf16 %v1908_v10  ;;  %v1265_v14 = vunpack.c.h.bf16 %v1908_v10  ;;  %v2109_v17 = vld [vmem:[%s2462_s1 + $0x30] sm:$0xff]   ;;  %v2114_v18 = vld [vmem:[%s2462_s1 + $0x68] sm:$0xff]   ;;  %1981 = vmatprep.subr.bf16.mxu1 %v2023_v19  ;;  %v1184_v23 = vunpack.c.l.bf16 %v1906_v16 }
   0x6   :  { %v806_v15 = vunpack.c.l.bf16 %v1892_v11  ;;  %v2117_v20 = vshrl.u32 %v106_v9, 7  ;;  %v2119_v21 = vand.u32 127, %v106_v9  ;;  %v833_v22 = vunpack.c.h.bf16 %v1892_v11  ;;  %v1888_v47 = vld [vmem:[%s2462_s1 + $0x28] sm:$0xff]   ;;  %v1902_v52 = vld [vmem:[%s2462_s1 + $0x60] sm:$0xff]   ;;  %v1900_v11 = vld [vmem:[%s2462_s1 + $0x58] sm:$0xff]  }
   0x7   :  { %v1211_v24 = vunpack.c.h.bf16 %v1906_v16  ;;  %v752_v25 = vunpack.c.l.bf16 %v2109_v17  ;;  %v779_v26 = vunpack.c.h.bf16 %v2109_v17  ;;  %v1130_v27 = vunpack.c.l.bf16 %v2114_v18  ;;  %v1886_v3 = vld [vmem:[%s2462_s1 + $0x20] sm:$0xff]  }
   0x8   :  { %v217_v28 = vadd.s32 384, %v2119_v21  ;;  %vm222_vm0 = vcmp.lt.s32.totalorder %v2119_v21, 60  ;;  %v1248_v29 = vadd.s32 240, %v2117_v20  ;;  %v1275_v30 = vadd.s32 248, %v2117_v20 }
   0x9   :  { %v816_v31 = vadd.s32 112, %v2117_v20  ;;  %v843_v32 = vadd.s32 120, %v2117_v20  ;;  %v1194_v33 = vadd.s32 224, %v2117_v20  ;;  %v1221_v34 = vadd.s32 232, %v2117_v20 }
   0xa   :  { %vm218_vm1 = vcmp.lt.s32.totalorder %v217_v28, 385  ;;  %vm1251_vm2 = vcmp.lt.s32.totalorder %v1248_v29, %v2077_v1  ;;  %vm1278_vm3 = vcmp.lt.s32.totalorder %v1275_v30, %v2077_v1  ;;  %v762_v35 = vadd.s32 96, %v2117_v20 }
   0xb   :  { %v219_v36 = vsel %vm218_vm1, %v87_v12, %v2085_v4  ;;  %v1256_v37 = vsel %vm1251_vm2, %v1238_v13, %v2087_v5  ;;  %v1283_v38 = vsel %vm1278_vm3, %v1265_v14, %v2087_v5  ;;  %vm819_vm4 = vcmp.lt.s32.totalorder %v816_v31, %v2077_v1 }
   0xc   :  { %v223_v39 = vsel %vm222_vm0, %v219_v36, %v2085_v4  ;;  %v1259_v40 = vpack.c.bf16 %v2023_v19, %v1256_v37  ;;  %v1286_v41 = vpack.c.bf16 %v2023_v19, %v1283_v38  ;;  %v824_v42 = vsel %vm819_vm4, %v806_v15, %v2087_v5 }
   0xd   :  { %224 = vrot.lane.b32.xlu0 %v223_v39, %s2024_s22  ;;  %v827_v43 = vpack.c.bf16 %v2023_v19, %v824_v42  ;;  %vm846_vm5 = vcmp.lt.s32.totalorder %v843_v32, %v2077_v1  ;;  %vm1197_vm6 = vcmp.lt.s32.totalorder %v1194_v33, %v2077_v1  ;;  %vm1224_vm7 = vcmp.lt.s32.totalorder %v1221_v34, %v2077_v1 }
   0xe   :  { %1262 = vst [vmem:[#allocation18 + $0x78] sm:$0xf] %v1259_v40  ;;  %1289 = vst [vmem:[#allocation18 + $0x7c] sm:$0xf] %v1286_v41  ;;  %v851_v44 = vsel %vm846_vm5, %v833_v22, %v2087_v5  ;;  %v1202_v45 = vsel %vm1197_vm6, %v1184_v23, %v2087_v5  ;;  %v1229_v46 = vsel %vm1224_vm7, %v1211_v24, %v2087_v5  ;;  %v789_v54 = vadd.s32 104, %v2117_v20  ;;  %v1898_v41 = vld [vmem:[%s2462_s1 + $0x50] sm:$0xff]  }
   0xf   :  { %vm765_vm8 = vcmp.lt.s32.totalorder %v762_v35, %v2077_v1  ;;  %830 = vst [vmem:[#allocation18 + $0x38] sm:$0xf] %v827_v43  ;;  %v854_v48 = vpack.c.bf16 %v2023_v19, %v851_v44  ;;  %v1205_v49 = vpack.c.bf16 %v2023_v19, %v1202_v45  ;;  %v1232_v50 = vpack.c.bf16 %v2023_v19, %v1229_v46  ;;  %v1882_v46 = vld [vmem:[%s2462_s1 + $0x10] sm:$0xff]  }
  0x10   :  { %v770_v51 = vsel %vm765_vm8, %v752_v25, %v2087_v5  ;;  %v1140_v55 = vadd.s32 208, %v2117_v20  ;;  %v1157_v56 = vunpack.c.h.bf16 %v2114_v18  ;;  %v1167_v57 = vadd.s32 216, %v2117_v20 }
  0x11   :  { %v773_v53 = vpack.c.bf16 %v2023_v19, %v770_v51  ;;  %857 = vst [vmem:[#allocation18 + $0x3c] sm:$0xf] %v854_v48  ;;  %1208 = vst [vmem:[#allocation18 + $0x70] sm:$0xf] %v1205_v49  ;;  %v698_v58 = vunpack.c.l.bf16 %v1888_v47  ;;  %v708_v59 = vadd.s32 80, %v2117_v20  ;;  %v725_v60 = vunpack.c.h.bf16 %v1888_v47 }
  0x12   :  { %1235 = vst [vmem:[#allocation18 + $0x74] sm:$0xf] %v1232_v50  ;;  %vm792_vm9 = vcmp.lt.s32.totalorder %v789_v54, %v2077_v1  ;;  %vm1143_vm10 = vcmp.lt.s32.totalorder %v1140_v55, %v2077_v1  ;;  %v735_v61 = vadd.s32 88, %v2117_v20  ;;  %v1076_v62 = vunpack.c.l.bf16 %v1902_v52 }
  0x13   :  { %776 = vst [vmem:[#allocation18 + $0x30] sm:$0xf] %v773_v53  ;;  %v797_v63 = vsel %vm792_vm9, %v779_v26, %v2087_v5  ;;  %v1148_v0 = vsel %vm1143_vm10, %v1130_v27, %v2087_v5  ;;  %vm1170_vm11 = vcmp.lt.s32.totalorder %v1167_v57, %v2077_v1  ;;  %vm711_vm12 = vcmp.lt.s32.totalorder %v708_v59, %v2077_v1  ;;  %v1884_v26 = vld [vmem:[%s2462_s1 + $0x18] sm:$0xff]  }
  0x14   :  { %v800_v6 = vpack.c.bf16 %v2023_v19, %v797_v63  ;;  %v1151_v8 = vpack.c.bf16 %v2023_v19, %v1148_v0  ;;  %v1175_v9 = vsel %vm1170_vm11, %v1157_v56, %v2087_v5  ;;  %v716_v10 = vsel %vm711_vm12, %v698_v58, %v2087_v5 }
  0x15   :  { %v1998_v12 = vld [vmem:[#allocation18 + $0x78] sm:$0xff]   ;;  %v1178_v13 = vpack.c.bf16 %v2023_v19, %v1175_v9  ;;  %v719_v14 = vpack.c.bf16 %v2023_v19, %v716_v10  ;;  %vm738_vm13 = vcmp.lt.s32.totalorder %v735_v61, %v2077_v1  ;;  %v1086_v15 = vadd.s32 192, %v2117_v20 }
  0x16   :  { %803 = vst [vmem:[#allocation18 + $0x34] sm:$0xf] %v800_v6  ;;  %1154 = vst [vmem:[#allocation18 + $0x68] sm:$0xf] %v1151_v8  ;;  %v743_v16 = vsel %vm738_vm13, %v725_v60, %v2087_v5  ;;  %v1103_v17 = vunpack.c.h.bf16 %v1902_v52  ;;  %v1113_v18 = vadd.s32 200, %v2117_v20  ;;  %v644_v22 = vunpack.c.l.bf16 %v1886_v3  ;;  %1953 = vmatprep.subr.bf16.mxu0 %v1998_v12 }
  0x17   :  { %1181 = vst [vmem:[#allocation18 + $0x6c] sm:$0xf] %v1178_v13  ;;  %722 = vst [vmem:[#allocation18 + $0x28] sm:$0xf] %v719_v14  ;;  %v746_v23 = vpack.c.bf16 %v2023_v19, %v743_v16  ;;  %vm1089_vm14 = vcmp.lt.s32.totalorder %v1086_v15, %v2077_v1  ;;  %v654_v24 = vadd.s32 64, %v2117_v20  ;;  %v671_v25 = vunpack.c.h.bf16 %v1886_v3  ;;  %v1896_v15 = vld [vmem:[%s2462_s1 + $0x48] sm:$0xff]  }
  0x18   :  { %v1999_v27 = vld [vmem:[#allocation18 + $0x38] sm:$0xff]   ;;  %v1094_v28 = vsel %vm1089_vm14, %v1076_v62, %v2087_v5  ;;  %vm1116_vm15 = vcmp.lt.s32.totalorder %v1113_v18, %v2077_v1  ;;  %v681_v29 = vadd.s32 72, %v2117_v20  ;;  %v1022_v30 = vunpack.c.l.bf16 %v1900_v11  ;;  %v2235_v62 = vld [vmem:[%s2462_s1 + $0xc] ss:$148 sps:$4 sm:$0xff]  }
  0x19   :  { %v2000_v31 = vld [vmem:[#allocation18 + $0x70] sm:$0xff]   ;;  %749 = vst [vmem:[#allocation18 + $0x2c] sm:$0xf] %v746_v23  ;;  %v1097_v32 = vpack.c.bf16 %v2023_v19, %v1094_v28  ;;  %v1121_v33 = vsel %vm1116_vm15, %v1103_v17, %v2087_v5  ;;  %vm657_vm0 = vcmp.lt.s32.totalorder %v654_v24, %v2077_v1  ;;  %v1032_v34 = vadd.s32 176, %v2117_v20  ;;  %1954 = vmatpush3.bf16.msra.mxu0 %v1999_v27 }
  0x1a   :  { %v1124_v35 = vpack.c.bf16 %v2023_v19, %v1121_v33  ;;  %v662_v36 = vsel %vm657_vm0, %v644_v22, %v2087_v5  ;;  %vm684_vm1 = vcmp.lt.s32.totalorder %v681_v29, %v2077_v1  ;;  %v1049_v37 = vunpack.c.h.bf16 %v1900_v11  ;;  %1955 = vmatprep.subr.bf16.mxu0 %v2000_v31 }
  0x1b   :  { %1100 = vst [vmem:[#allocation18 + $0x60] sm:$0xf] %v1097_v32  ;;  %v665_v38 = vpack.c.bf16 %v2023_v19, %v662_v36  ;;  %v689_v39 = vsel %vm684_vm1, %v671_v25, %v2087_v5  ;;  %vm1035_vm2 = vcmp.lt.s32.totalorder %v1032_v34, %v2077_v1  ;;  %v1059_v40 = vadd.s32 184, %v2117_v20  ;;  %v98_v25 = vld [vmem:[%s2468_s7] sm:$0xff]  }
  0x1c   :  { %1127 = vst [vmem:[#allocation18 + $0x64] sm:$0xf] %v1124_v35  ;;  %v692_v42 = vpack.c.bf16 %v2023_v19, %v689_v39  ;;  %v1040_v43 = vsel %vm1035_vm2, %v1022_v30, %v2087_v5  ;;  %v590_v44 = vunpack.c.l.bf16 %v1884_v26  ;;  %v600_v45 = vadd.s32 48, %v2117_v20  ;;  %v1870_v39 = vld [vmem:[%s2468_s7 + $0x8] sm:$0xf] }
  0x1d   :  { %v2001_v47 = vld [vmem:[#allocation18 + $0x30] sm:$0xff]   ;;  %668 = vst [vmem:[#allocation18 + $0x20] sm:$0xf] %v665_v38  ;;  %v1043_v48 = vpack.c.bf16 %v2023_v19, %v1040_v43  ;;  %vm1062_vm3 = vcmp.lt.s32.totalorder %v1059_v40, %v2077_v1  ;;  %v617_v49 = vunpack.c.h.bf16 %v1884_v26  ;;  %v627_v50 = vadd.s32 56, %v2117_v20 }
  0x1e   :  { %v2002_v51 = vld [vmem:[#allocation18 + $0x68] sm:$0xff]   ;;  %695 = vst [vmem:[#allocation18 + $0x24] sm:$0xf] %v692_v42  ;;  %v1067_v52 = vsel %vm1062_vm3, %v1049_v37, %v2087_v5  ;;  %vm603_vm4 = vcmp.lt.s32.totalorder %v600_v45, %v2077_v1  ;;  %v968_v53 = vunpack.c.l.bf16 %v1898_v41  ;;  %v978_v54 = vadd.s32 160, %v2117_v20  ;;  %1956 = vmatpush3.bf16.msra.mxu0 %v2001_v47 }
  0x1f   :  { %1046 = vst [vmem:[#allocation18 + $0x58] sm:$0xf] %v1043_v48  ;;  %v1070_v55 = vpack.c.bf16 %v2023_v19, %v1067_v52  ;;  %v608_v56 = vsel %vm603_vm4, %v590_v44, %v2087_v5  ;;  %vm630_vm5 = vcmp.lt.s32.totalorder %v627_v50, %v2077_v1  ;;  %v995_v57 = vunpack.c.h.bf16 %v1898_v41  ;;  %1957 = vmatprep.subr.bf16.mxu0 %v2002_v51  ;;  %v1879_v48 = vld [vmem:[%s2462_s1 + $0x4] sm:$0xff]  }
  0x20   :  { %v2003_v58 = vld [vmem:[#allocation18 + $0x28] sm:$0xff]   ;;  %v611_v59 = vpack.c.bf16 %v2023_v19, %v608_v56  ;;  %v635_v60 = vsel %vm630_vm5, %v617_v49, %v2087_v5  ;;  %vm981_vm6 = vcmp.lt.s32.totalorder %v978_v54, %v2077_v1  ;;  %v1005_v61 = vadd.s32 168, %v2117_v20 }
  0x21   :  { %1073 = vst [vmem:[#allocation18 + $0x5c] sm:$0xf] %v1070_v55  ;;  %v638_v63 = vpack.c.bf16 %v2023_v19, %v635_v60  ;;  %v986_v0 = vsel %vm981_vm6, %v968_v53, %v2087_v5  ;;  %v536_v3 = vunpack.c.l.bf16 %v1882_v46  ;;  %v546_v6 = vadd.s32 32, %v2117_v20 }
  0x22   :  { %614 = vst [vmem:[#allocation18 + $0x18] sm:$0xf] %v611_v59  ;;  %v989_v8 = vpack.c.bf16 %v2023_v19, %v986_v0  ;;  %vm1008_vm7 = vcmp.lt.s32.totalorder %v1005_v61, %v2077_v1  ;;  %v563_v9 = vunpack.c.h.bf16 %v1882_v46  ;;  %v573_v10 = vadd.s32 40, %v2117_v20  ;;  %1958 = vmatpush3.bf16.msra.mxu0 %v2003_v58 }
  0x23   :  { %v2004_v11 = vld [vmem:[#allocation18 + $0x60] sm:$0xff]   ;;  %641 = vst [vmem:[#allocation18 + $0x1c] sm:$0xf] %v638_v63  ;;  %v1013_v12 = vsel %vm1008_vm7, %v995_v57, %v2087_v5  ;;  %vm549_vm8 = vcmp.lt.s32.totalorder %v546_v6, %v2077_v1  ;;  %v1526_v13 = vunpack.c.h.bf16 %v2235_v62  ;;  %v1530_v14 = vadd.s32 320, %v2117_v20 }
  0x24   :  { %992 = vst [vmem:[#allocation18 + $0x50] sm:$0xf] %v989_v8  ;;  %v1016_v16 = vpack.c.bf16 %v2023_v19, %v1013_v12  ;;  %v554_v17 = vsel %vm549_vm8, %v536_v3, %v2087_v5  ;;  %vm576_vm9 = vcmp.lt.s32.totalorder %v573_v10, %v2077_v1  ;;  %v1554_v18 = vadd.s32 328, %v2117_v20  ;;  %1959 = vmatprep.subr.bf16.mxu0 %v2004_v11 }
  0x25   :  { %v2005_v22 = vld [vmem:[#allocation18 + $0x20] sm:$0xff]   ;;  %v557_v23 = vpack.c.bf16 %v2023_v19, %v554_v17  ;;  %v581_v24 = vsel %vm576_vm9, %v563_v9, %v2087_v5  ;;  %vm1531_vm10 = vcmp.lt.s32.totalorder %v1530_v14, 324  ;;  %vm1539_vm11 = vcmp.lt.s32.totalorder %v1530_v14, %v2077_v1 }
  0x26   :  { %1019 = vst [vmem:[#allocation18 + $0x54] sm:$0xf] %v1016_v16  ;;  %v584_v26 = vpack.c.bf16 %v2023_v19, %v581_v24  ;;  %v1532_v27 = vsel %vm1531_vm10, %v1526_v13, %v2092_v7  ;;  %vm1557_vm12 = vcmp.lt.s32.totalorder %v1554_v18, %v2077_v1  ;;  %v914_v28 = vunpack.c.l.bf16 %v1896_v15  ;;  %1960 = vmatpush3.bf16.msra.mxu0 %v2005_v22  ;;  %v1916_v9 = vld [vmem:[%s2462_s1 + $0x98] sm:$0xff]  }
  0x27   :  { %560 = vst [vmem:[#allocation18 + $0x10] sm:$0xf] %v557_v23  ;;  %v1544_v29 = vsel %vm1539_vm11, %v1532_v27, %v2087_v5  ;;  %v1562_v30 = vsel %vm1557_vm12, %v2092_v7, %v2087_v5  ;;  %v924_v31 = vadd.s32 144, %v2117_v20  ;;  %v941_v32 = vunpack.c.h.bf16 %v1896_v15 }
  0x28   :  { %v2006_v33 = vld [vmem:[#allocation18 + $0x58] sm:$0xff]   ;;  %587 = vst [vmem:[#allocation18 + $0x14] sm:$0xf] %v584_v26  ;;  %v1547_v34 = vpack.c.bf16 %v2023_v19, %v1544_v29  ;;  %v1565_v35 = vpack.c.bf16 %v2023_v19, %v1562_v30  ;;  %v951_v36 = vadd.s32 152, %v2117_v20  ;;  %v99_v37 = vunpack.c.l.bf16 %v98_v25  ;;  %v1894_v26 = vld [vmem:[%s2462_s1 + $0x40] sm:$0xff]  }
  0x29   :  { %vm927_vm13 = vcmp.lt.s32.totalorder %v924_v31, %v2077_v1  ;;  %vm2276_vm14 = vcmp.lt.s32.totalorder %v2117_v20, %v19_v2  ;;  %vm121_vm15 = vcmp.lt.s32.totalorder %v2119_v21, %v2077_v1  ;;  %v162_v38 = vunpack.c.h.bf16 %v98_v25  ;;  %1961 = vmatprep.subr.bf16.mxu0 %v2006_v33 }
  0x2a   :  { %v2007_v40 = vld [vmem:[#allocation18 + $0x18] sm:$0xff]   ;;  %1550 = vst [vmem:[#allocation18 + $0xa0] sm:$0xf] %v1547_v34  ;;  %1568 = vst [vmem:[#allocation18 + $0xa4] sm:$0xf] %v1565_v35  ;;  %v932_v41 = vsel %vm927_vm13, %v914_v28, %v2087_v5  ;;  %vm954_vm0 = vcmp.lt.s32.totalorder %v951_v36, %v2077_v1  ;;  %v127_v42 = vsel %vm2276_vm14, %v99_v37, %v2087_v5  ;;  %v181_v51 = vadd.s32 128, %v2119_v21 }
  0x2b   :  { %vm1865_vm1 = vmand %vm2276_vm14, %vm121_vm15  ;;  %v136_v43 = vsel %vm2276_vm14, %v2085_v4, %v2087_v5  ;;  %v935_v44 = vpack.c.bf16 %v2023_v19, %v932_v41  ;;  %v959_v45 = vsel %vm954_vm0, %v941_v32, %v2087_v5  ;;  %1962 = vmatpush3.bf16.msra.mxu0 %v2007_v40  ;;  %v190_v52 = vsel %vm2276_vm14, %v162_v38, %v2087_v5  ;;  %v428_v34 = vld [vmem:[%s2462_s1] sm:$0xf] }
  0x2c   :  { %v132_v46 = vsel %vm1865_vm1, %v127_v42, %v2087_v5  ;;  %v141_v47 = vsel %vm1865_vm1, %v136_v43, %v2087_v5  ;;  %v962_v49 = vpack.c.bf16 %v2023_v19, %v959_v45  ;;  %v237_v54 = vunpack.c.l.bf16 %v1870_v39  ;;  %v1914_v39 = vld [vmem:[%s2462_s1 + $0x90] sm:$0xff]  }
  0x2d   :  { %v145_v50 = vmax.f32 %v132_v46, %v141_v47  ;;  %v2008_v53 = vld [vmem:[#allocation18 + $0x50] sm:$0xff]   ;;  %938 = vst [vmem:[#allocation18 + $0x48] sm:$0xf] %v935_v44  ;;  %v241_v55 = vadd.s32 256, %v2119_v21  ;;  %v293_v56 = vadd.s32 8, %v2117_v20  ;;  %v455_v57 = vunpack.c.l.bf16 %v1879_v48 }
  0x2e   :  { %965 = vst [vmem:[#allocation18 + $0x4c] sm:$0xf] %v962_v49  ;;  %vm184_vm2 = vcmp.lt.s32.totalorder %v181_v51, %v2077_v1  ;;  %v482_v59 = vunpack.c.h.bf16 %v1879_v48  ;;  %v492_v60 = vadd.s32 16, %v2117_v20  ;;  %1963 = vmatprep.subr.bf16.mxu0 %v2008_v53  ;;  %v509_v16 = vunpack.c.l.bf16 %v2235_v62  ;;  %v1912_v48 = vld [vmem:[%s2462_s1 + $0x88] sm:$0xff]   ;;  %v1910_v53 = vld [vmem:[%s2462_s1 + $0x80] sm:$0xff]  }
  0x2f   :  { %v147_v58 = vpack.c.bf16 %v2023_v19, %v145_v50  ;;  %v2009_v61 = vld [vmem:[#allocation18 + $0x10] sm:$0xff]   ;;  %vm1868_vm3 = vmand %vm2276_vm14, %vm184_vm2  ;;  %vm242_vm4 = vcmp.lt.s32.totalorder %v241_v55, 324  ;;  %vm259_vm5 = vcmp.lt.s32.totalorder %v241_v55, %v2077_v1  ;;  %vm2325_vm6 = vcmp.lt.s32.totalorder %v293_v56, %v19_v2 }
  0x30   :  { %vm468_vm7 = vcmp.lt.s32.totalorder %v293_v56, %v2077_v1  ;;  %v195_v0 = vsel %vm1868_vm3, %v190_v52, %v2087_v5  ;;  %v204_v3 = vsel %vm1868_vm3, %v136_v43, %v2087_v5  ;;  %v243_v6 = vsel %vm242_vm4, %v237_v54, %v2085_v4  ;;  %vm2337_vm8 = vmand %vm2276_vm14, %vm259_vm5  ;;  %1964 = vmatpush3.bf16.msra.mxu0 %v2009_v61 }
  0x31   :  { %150 = vst [vmem:[#allocation17] sm:$0xf] %v147_v58  ;;  %v311_v2 = vsel %vm2325_vm6, %v2085_v4, %v2087_v5  ;;  %v2010_v10 = vld [vmem:[#allocation18 + $0xa0] sm:$0xff]   ;;  %v208_v11 = vmax.f32 %v195_v0, %v204_v3  ;;  %v265_v12 = vsel %vm2276_vm14, %v243_v6, %v2087_v5  ;;  %v473_v13 = vsel %vm468_vm7, %v455_v57, %v2087_v5  ;;  %vm1873_vm10 = vmand %vm2325_vm6, %vm121_vm15 }
  0x32   :  { %vm495_vm9 = vcmp.lt.s32.totalorder %v492_v60, %v2077_v1  ;;  %v2356_v14 = vsel %vm2337_vm8, %v265_v12, %v2087_v5  ;;  %v476_v4 = vpack.c.bf16 %v2023_v19, %v473_v13  ;;  %1982 = vmatpush3.bf16.msra.mxu1 %v2010_v10  ;;  %v316_v18 = vsel %vm1873_vm10, %v311_v2, %v2087_v5  ;;  %vm1875_vm11 = vmand %vm2325_vm6, %vm184_vm2 }
  0x33   :  { %v500_v15 = vsel %vm495_vm9, %v482_v59, %v2087_v5  ;;  %v211_v17 = vpack.c.bf16 %v2023_v19, %v208_v11  ;;  %v519_v22 = vadd.s32 24, %v2117_v20  ;;  %v332_v23 = vpack.c.bf16 %v2023_v19, %v316_v18  ;;  %vm1877_vm12 = vmand %vm2325_vm6, %vm259_vm5  ;;  %1983 = vmatprep.subr.bf16.mxu1 %v2023_v19 }
  0x34   :  { %v503_v21 = vpack.c.bf16 %v2023_v19, %v500_v15  ;;  %v362_v24 = vsel %vm1875_vm11, %v311_v2, %v2087_v5  ;;  %479 = vst [vmem:[#allocation18 + $0x4] sm:$0xf] %v476_v4  ;;  %v1454_v62 = vunpack.c.l.bf16 %v1916_v9  ;;  %v1464_v25 = vadd.s32 304, %v2117_v20 }
  0x35   :  { %v2011_v27 = vld [vmem:[#allocation18 + $0x48] sm:$0xff]   ;;  %214 = vst [vmem:[#allocation17 + $0x4] sm:$0xf] %v211_v17  ;;  %v378_v28 = vpack.c.bf16 %v2023_v19, %v362_v24  ;;  %v408_v29 = vsel %vm1877_vm12, %v311_v2, %v2087_v5  ;;  %vm522_vm13 = vcmp.lt.s32.totalorder %v519_v22, %v2077_v1  ;;  %v1490_v30 = vunpack.c.h.bf16 %v1916_v9  ;;  %335 = vst [vmem:[#allocation17 + $0xc] sm:$0xf] %v332_v23 }
  0x36   :  { %506 = vst [vmem:[#allocation18 + $0x8] sm:$0xf] %v503_v21  ;;  %v424_v31 = vpack.c.bf16 %v2023_v19, %v408_v29  ;;  %v527_v32 = vsel %vm522_vm13, %v509_v16, %v2087_v5  ;;  %vm1467_vm15 = vcmp.lt.s32.totalorder %v1464_v25, %v2077_v1  ;;  %v1500_v33 = vadd.s32 312, %v2117_v20  ;;  %1965 = vmatprep.subr.bf16.mxu0 %v2011_v27 }
  0x37   :  { %381 = vst [vmem:[#allocation17 + $0x10] sm:$0xf] %v378_v28  ;;  %v530_v35 = vpack.c.bf16 %v2023_v19, %v527_v32  ;;  %v1472_v36 = vsel %vm1467_vm15, %v1454_v62, %v2087_v5  ;;  %v860_v37 = vunpack.c.l.bf16 %v1894_v26  ;;  %v870_v38 = vadd.s32 128, %v2117_v20 }
  0x38   :  { %427 = vst [vmem:[#allocation17 + $0x14] sm:$0xf] %v424_v31  ;;  %v1475_v40 = vpack.c.bf16 %v2023_v19, %v1472_v36  ;;  %vm1503_vm0 = vcmp.lt.s32.totalorder %v1500_v33, %v2077_v1  ;;  %v887_v41 = vunpack.c.h.bf16 %v1894_v26  ;;  %v897_v42 = vadd.s32 136, %v2117_v20 }
  0x39   :  { %533 = vst [vmem:[#allocation18 + $0xc] sm:$0xf] %v530_v35  ;;  %v1508_v43 = vsel %vm1503_vm0, %v1490_v30, %v2087_v5  ;;  %vm873_vm1 = vcmp.lt.s32.totalorder %v870_v38, %v2077_v1  ;;  %v429_v44 = vunpack.c.l.bf16 %v428_v34  ;;  %vm442_vm2 = vcmp.lt.s32.totalorder %v2117_v20, %v2077_v1 }
  0x3a   :  { %1478 = vst [vmem:[#allocation18 + $0x98] sm:$0xf] %v1475_v40  ;;  %v1511_v45 = vpack.c.bf16 %v2023_v19, %v1508_v43  ;;  %v878_v46 = vsel %vm873_vm1, %v860_v37, %v2087_v5  ;;  %vm900_vm3 = vcmp.lt.s32.totalorder %v897_v42, %v2077_v1  ;;  %v1400_v47 = vunpack.c.l.bf16 %v1914_v39 }
  0x3b   :  { %v881_v49 = vpack.c.bf16 %v2023_v19, %v878_v46  ;;  %v905_v50 = vsel %vm900_vm3, %v887_v41, %v2087_v5  ;;  %v447_v51 = vsel %vm442_vm2, %v429_v44, %v2087_v5  ;;  %v1410_v52 = vadd.s32 288, %v2117_v20 }
  0x3c   :  { %1514 = vst [vmem:[#allocation18 + $0x9c] sm:$0xf] %v1511_v45  ;;  %v908_v54 = vpack.c.bf16 %v2023_v19, %v905_v50  ;;  %v449_v55 = vpack.c.bf16 %v2023_v19, %v447_v51  ;;  %v1427_v56 = vunpack.c.h.bf16 %v1914_v39  ;;  %v1437_v57 = vadd.s32 296, %v2117_v20  ;;  %v2016_v25 = vld [vmem:[#allocation17] ss:$12 sps:$4 sm:$0xff]  }
  0x3d   :  { %884 = vst [vmem:[#allocation18 + $0x40] sm:$0xf] %v881_v49  ;;  %vm1413_vm4 = vcmp.lt.s32.totalorder %v1410_v52, %v2077_v1  ;;  %v1346_v58 = vunpack.c.l.bf16 %v1912_v48  ;;  %v1356_v59 = vadd.s32 272, %v2117_v20  ;;  %v1373_v60 = vunpack.c.h.bf16 %v1912_v48 }
  0x3e   :  { %911 = vst [vmem:[#allocation18 + $0x44] sm:$0xf] %v908_v54  ;;  %452 = vst [vmem:[#allocation18] sm:$0xf] %v449_v55  ;;  %v2018_v61 = vld [vmem:[#allocation17 + $0x4] ss:$12 sps:$4 sm:$0xff]   ;;  %v1418_v63 = vsel %vm1413_vm4, %v1400_v47, %v2087_v5  ;;  %vm1440_vm5 = vcmp.lt.s32.totalorder %v1437_v57, %v2077_v1  ;;  %v1292_v3 = vunpack.c.l.bf16 %v1910_v53  ;;  %v1319_v13 = vunpack.c.h.bf16 %v1910_v53 }
  0x3f   :  { %v1383_v0 = vadd.s32 280, %v2117_v20  ;;  %v1421_v6 = vpack.c.bf16 %v2023_v19, %v1418_v63  ;;  %v1445_v2 = vsel %vm1440_vm5, %v1427_v56, %v2087_v5  ;;  %vm1359_vm6 = vcmp.lt.s32.totalorder %v1356_v59, %v2077_v1  ;;  %1793 = vmatprep.mubr.bf16.mxu0 %v2018_v61 }
  0x40   :  { %v1302_v9 = vadd.s32 256, %v2117_v20  ;;  %v2012_v10 = vld [vmem:[#allocation18 + $0x8] sm:$0xff]   ;;  %v1448_v11 = vpack.c.bf16 %v2023_v19, %v1445_v2  ;;  %v1364_v12 = vsel %vm1359_vm6, %v1346_v58, %v2087_v5  ;;  %v1329_v16 = vadd.s32 264, %v2117_v20 }
  0x41   :  { %vm1386_vm7 = vcmp.lt.s32.totalorder %v1383_v0, %v2077_v1  ;;  %1424 = vst [vmem:[#allocation18 + $0x90] sm:$0xf] %v1421_v6  ;;  %v1367_v4 = vpack.c.bf16 %v2023_v19, %v1364_v12  ;;  %1966 = vmatpush3.bf16.msra.mxu0 %v2012_v10  ;;  %vm2025_vm11 = vmmov 0   ;;  %vm1757_vm12 = vcmask 654336  }
  0x42   :  { %v1391_v15 = vsel %vm1386_vm7, %v1373_v60, %v2087_v5  ;;  %vm1305_vm9 = vcmp.lt.s32.totalorder %v1302_v9, %v2077_v1  ;;  %1451 = vst [vmem:[#allocation18 + $0x94] sm:$0xf] %v1448_v11  ;;  %vm1332_vm10 = vcmp.lt.s32.totalorder %v1329_v16, %v2077_v1  ;;  %1991 = vmatprep.mubr.msk.bf16.mxu1 %vm2025_vm11, %v2023_v19 }
  0x43   :  { %v1394_v17 = vpack.c.bf16 %v2023_v19, %v1391_v15  ;;  %v1310_v18 = vsel %vm1305_vm9, %v1292_v3, %v2087_v5  ;;  %v2013_v21 = vld [vmem:[#allocation18 + $0x98] sm:$0xff]   ;;  %1370 = vst [vmem:[#allocation18 + $0x88] sm:$0xf] %v1367_v4  ;;  %v1337_v23 = vsel %vm1332_vm10, %v1319_v13, %v2087_v5 }
  0x44   :  { %v1313_v22 = vpack.c.bf16 %v2023_v19, %v1310_v18  ;;  %1984 = vmatpush3.bf16.msra.mxu1 %v2013_v21  ;;  %v1340_v24 = vpack.c.bf16 %v2023_v19, %v1337_v23 }
  0x45   :  { %1397 = vst [vmem:[#allocation18 + $0x8c] sm:$0xf] %v1394_v17  ;;  %v2014_v20 = vld [vmem:[#allocation18 + $0x40] sm:$0xff]   ;;  %1985 = vmatprep.subr.bf16.mxu1 %v2023_v19 }
  0x46   :  { %1316 = vst [vmem:[#allocation18 + $0x80] sm:$0xf] %v1313_v22  ;;  %v2015_v62 = vld [vmem:[#allocation18] sm:$0xff]   ;;  %1967 = vmatprep.subr.bf16.mxu0 %v2014_v20  ;;  %1343 = vst [vmem:[#allocation18 + $0x84] sm:$0xf] %v1340_v24 }
  0x47   :  { %1968 = vmatpush3.bf16.msra.mxu0 %v2015_v62 }
  0x49   :  { %v2019_v26 = vld [vmem:[#allocation18 + $0x90] sm:$0xff]  }
  0x4a   :  { %1986 = vmatpush3.bf16.msra.mxu1 %v2019_v26  ;;  %1794 = vmatmul.mubr.bf16.vlgmr.msra.gmra.mxu0 %v2016_v25 }
  0x4b   :  { %1987 = vmatprep.subr.bf16.mxu1 %v2023_v19 }
  0x4c   :  { %v2020_v1 = vld [vmem:[#allocation18 + $0x88] sm:$0xff]  }
  0x4d   :  { %v2021_v27 = vld [vmem:[#allocation18 + $0x80] sm:$0xff]  }
  0x4e   :  { %1988 = vmatpush3.bf16.msra.mxu1 %v2020_v1 }
  0x4f   :  { %1989 = vmatprep.subr.bf16.mxu1 %v2023_v19 }
  0x52   :  { %1990 = vmatpush3.bf16.msra.mxu1 %v2021_v27 }
  0x7f   :  { %v225_v28 = vpop.permute.xlu0 %224 }
  0x80   :  { %v274_v29 = vsel %vm2276_vm14, %v225_v28, %v2087_v5 }
  0x81   :  { %v279_v30 = vsel %vm2337_vm8, %v274_v29, %v2087_v5 }
  0x82   :  { %v283_v31 = vmax.f32 %v2356_v14, %v279_v30 }
  0x84   :  { %v286_v32 = vpack.c.bf16 %v2023_v19, %v283_v31 }
  0x86   :  { %289 = vst [vmem:[#allocation17 + $0x8] sm:$0xf] %v286_v32 }
  0x8d   :  { %v2022_v33 = vld [vmem:[#allocation17 + $0x8] ss:$12 sps:$4 sm:$0xff]  }
  0x8e   :  { %1992 = vmatmul.mubr.msk.bf16.vlgmr.msra.gmra.mxu1 %vm1757_vm12, %v2022_v33 }
 0x10a   :  { %v1969_v34 = vpop.f32.mrf.mxu0 }
 0x10c   :  { %v1970_v35 = vpop.f32.mrf.mxu0 }
 0x10d   :  { %v1971_v39 = vadd.f32 %v1970_v35, %v1969_v34 }
 0x10e   :  { %v1972_v36 = vpop.f32.mrf.mxu0 }
 0x110   :  { %v1973_v37 = vpop.f32.mrf.mxu0 }
 0x111   :  { %v1974_v40 = vadd.f32 %v1973_v37, %v1972_v36 }
 0x14e   :  { %v1836_v38 = vpop.f32.mrf.mxu1 }
 0x14f   :  { %v1837_v41 = vadd.f32 %v1971_v39, %v1836_v38 }
 0x150   :  { %v1993_v7 = vpop.f32.mrf.mxu1 }
 0x151   :  { %v1843_v43 = vmax.f32 %v1837_v41, 0.0 }
 0x152   :  { %v1839_v42 = vpop.f32.mrf.mxu1 }
 0x153   :  { %v1840_v8 = vadd.f32 %v1974_v40, %v1839_v42 }
 0x154   :  { %v1994_v5 = vpop.f32.mrf.mxu1 }
 0x155   :  { %v1844_v14 = vmax.f32 %v1840_v8, 0.0 }
 0x157   :  { %v1951_v44 = vpack.c.bf16 %v1844_v14, %v1843_v43 }
 0x159   :  { %1952 = vst [vmem:[%s2469_s8] sm:$0xff] %v1951_v44  }

</bundles_post_ra>
